<compile_context>
chip_gen: v6e
topology: v6e:2x2x1
jax: 0.10.0
libtpu: 0.0.40
codegen_flags: <defaults>
</compile_context>

<pallas_src>
import functools

import jax
import jax.numpy as jnp
from jax.experimental import pallas as pl
from jax.experimental.pallas import tpu as pltpu

EPS = 1e-5
F_IN = 100        # real per-branch feature width
FP = 128          # lane-aligned per-branch column pitch in the block-diagonal weight
N_BRANCH = 3


def _shared_linear_bn_kernel(x_ref, w_ref, gamma_ref, beta_ref, o1_ref, o2_ref, o3_ref):
    # x_ref: (N, 300)   w_ref: (300, 384) block-diagonal   gamma/beta_ref: (3, 1, 100)
    # o{1,2,3}_ref: (N, 100)
    # One MXU matmul covers all three branches (K padded 300->384 internally).
    y = jnp.dot(x_ref[...], w_ref[...], preferred_element_type=jnp.float32)  # (N, 384)

    out_refs = (o1_ref, o2_ref, o3_ref)
    for i in range(N_BRANCH):
        lo = i * FP
        yi = y[:, lo:lo + F_IN]                                    # (N, 100), 128-aligned start

        # BatchNorm1d training mode: batch mean + biased batch variance (two-pass).
        mean = jnp.mean(yi, axis=0, keepdims=True)                 # (1, 100)
        var = jnp.mean(jnp.square(yi - mean), axis=0, keepdims=True)

        # Fused affine epilogue: out = y * scale + shift.
        scale = gamma_ref[i] * jax.lax.rsqrt(var + EPS)            # rsqrt -> EUP slot
        shift = beta_ref[i] - mean * scale
        out_refs[i][...] = yi * scale + shift                      # masked 100-of-128 vst


def _vmem_cap_bytes():
    """Generation-aware VMEM request ceiling: 0.8 * physical VMEM."""
    cap = 64 * 1024 * 1024
    try:
        info = pltpu.get_tpu_info()
        cap = int(getattr(info, "vmem_capacity_bytes", cap) or cap)
    except Exception:
        pass
    return int(0.8 * cap)


def shared_linear_layers(x, weights, biases, gammas, betas, *, shared: bool):
    """x: (N, 300) f32. weights: (3, 100, 100) stored as (in, out). biases are accepted
    for interface parity but are mathematically dead under training-mode BatchNorm.
    Returns a tuple of three (N, 100) arrays, matching the PyTorch module."""
    del biases  # cancels exactly in (y - mean); see header comment
    N = x.shape[0]
    assert x.shape[1] == N_BRANCH * F_IN

    # Block-diagonal weight slab (tiny: 300x384 f32 ~ 460 KB, weights only -- no extra
    # HBM pass over activations). shared=True simply replicates weights[0] on the diagonal.
    w_big = jnp.zeros((N_BRANCH * F_IN, N_BRANCH * FP), jnp.float32)
    for i in range(N_BRANCH):
        wi = weights[0] if shared else weights[i]
        w_big = w_big.at[i * F_IN:(i + 1) * F_IN, i * FP:i * FP + F_IN].set(wi)

    # BN affine params are per branch even when the linear is shared.
    g = gammas.reshape(N_BRANCH, 1, F_IN).astype(jnp.float32)
    b = betas.reshape(N_BRANCH, 1, F_IN).astype(jnp.float32)

    # VMEM estimate: x + materialized f32 y + (tile-padded) outputs + weight + params,
    # 2x headroom, clamped to the generation-aware cap.
    est = 4 * (N * N_BRANCH * F_IN                          # x
               + N * N_BRANCH * FP                          # y (f32 matmul result)
               + N_BRANCH * N * FP                          # outputs (lane-padded tiles)
               + (N_BRANCH * F_IN) * (N_BRANCH * FP)        # block-diagonal weight
               + 2 * N_BRANCH * 8 * FP)                     # gamma/beta (tile-padded)
    vmem_limit = int(min(_vmem_cap_bytes(), max(16 * 1024 * 1024, 2 * est)))

    out_shapes = tuple(jax.ShapeDtypeStruct((N, F_IN), jnp.float32)
                       for _ in range(N_BRANCH))
    outs = pl.pallas_call(
        _shared_linear_bn_kernel,
        out_shape=out_shapes,
        compiler_params=pltpu.CompilerParams(vmem_limit_bytes=vmem_limit),
    )(x, w_big, g, b)
    return tuple(outs)


def _reference(x, weights, biases, gammas, betas, *, shared: bool):
    # Pure-JAX reference that keeps the bias add, to verify it indeed cancels.
    outs = []
    for i in range(N_BRANCH):
        wi = 0 if shared else i
        xi = x[:, i * F_IN:(i + 1) * F_IN]
        y = xi @ weights[wi] + biases[wi]
        mean = jnp.mean(y, axis=0, keepdims=True)
        var = jnp.mean((y - mean) ** 2, axis=0, keepdims=True)
        y_hat = (y - mean) / jnp.sqrt(var + EPS)
        outs.append(gammas[i] * y_hat + betas[i])
    return tuple(outs)


if __name__ == "__main__":
    key = jax.random.PRNGKey(0)
    k_x, k_w, k_b, k_g, k_bt = jax.random.split(key, 5)

    N = 8  # small batch; multiple of 8 keeps the sublane dim of the (N, *) tiles aligned
    x = jax.random.normal(k_x, (N, 300), dtype=jnp.float32)

    # Deterministic nn.Linear-like init; weights stored as (in, out).
    bound = 1.0 / (100.0 ** 0.5)
    weights = jax.random.uniform(k_w, (3, 100, 100), jnp.float32, -bound, bound)
    biases = jax.random.uniform(k_b, (3, 100), jnp.float32, -bound, bound)
    # BatchNorm affine params (randomized to exercise the fused epilogue).
    gammas = 1.0 + 0.1 * jax.random.normal(k_g, (3, 100), dtype=jnp.float32)
    betas = 0.1 * jax.random.normal(k_bt, (3, 100), dtype=jnp.float32)

    for shared in (True, False):
        fn = jax.jit(functools.partial(shared_linear_layers, shared=shared))
        out = jax.block_until_ready(fn(x, weights, biases, gammas, betas))
        ref = _reference(x, weights, biases, gammas, betas, shared=shared)
        for o, r in zip(out, ref):
            assert o.shape == (N, 100)
            assert jnp.allclose(o, r, atol=2e-4, rtol=2e-4), "mismatch vs reference"

    print("KERNEL_OK")
</pallas_src>

<mosaic_0001>
module attributes {stable_mosaic.version = 11 : i64} {
  func.func @_shared_linear_bn_kernel(%arg0: memref<8x300xf32, #tpu.memory_space<vmem>>, %arg1: memref<300x384xf32, #tpu.memory_space<vmem>>, %arg2: memref<3x1x100xf32, #tpu.memory_space<vmem>>, %arg3: memref<3x1x100xf32, #tpu.memory_space<vmem>>, %arg4: memref<8x100xf32, #tpu.memory_space<vmem>>, %arg5: memref<8x100xf32, #tpu.memory_space<vmem>>, %arg6: memref<8x100xf32, #tpu.memory_space<vmem>>) attributes {dimension_semantics = [], scalar_prefetch = 0 : i64, scratch_operands = 0 : i64, tpu.core_type = #tpu.core_type<tc>} {
    %c0 = arith.constant 0 : index
    %c0_0 = arith.constant 0 : index
    %0 = vector.load %arg0[%c0, %c0_0] : memref<8x300xf32, #tpu.memory_space<vmem>>, vector<8x300xf32>
    %c0_1 = arith.constant 0 : index
    %c0_2 = arith.constant 0 : index
    %1 = vector.load %arg1[%c0_1, %c0_2] : memref<300x384xf32, #tpu.memory_space<vmem>>, vector<300x384xf32>
    %cst = arith.constant dense<0.000000e+00> : vector<8x384xf32>
    %2 = tpu.matmul %0, %1, %cst {dimension_numbers = #tpu.dot_dimension_numbers<[1], [0], [0], [1], [0, 0, 1, 1], [], []>} : vector<8x300xf32>, vector<300x384xf32>, vector<8x384xf32> -> vector<8x384xf32>
    %3 = vector.extract_strided_slice %2 {offsets = [0, 0], sizes = [8, 100], strides = [1, 1]} : vector<8x384xf32> to vector<8x100xf32>
    %cst_3 = arith.constant dense<0.000000e+00> : vector<100xf32>
    %4 = vector.multi_reduction <add>, %3, %cst_3 [0] : vector<8x100xf32> to vector<100xf32>
    %5 = vector.shape_cast %4 : vector<100xf32> to vector<1x100xf32>
    %cst_4 = arith.constant 8.000000e+00 : f32
    %6 = vector.broadcast %cst_4 : f32 to vector<1x100xf32>
    %7 = arith.divf %5, %6 : vector<1x100xf32>
    %8 = vector.broadcast %7 : vector<1x100xf32> to vector<8x100xf32>
    %9 = arith.subf %3, %8 : vector<8x100xf32>
    %10 = arith.mulf %9, %9 : vector<8x100xf32>
    %cst_5 = arith.constant dense<0.000000e+00> : vector<100xf32>
    %11 = vector.multi_reduction <add>, %10, %cst_5 [0] : vector<8x100xf32> to vector<100xf32>
    %12 = vector.shape_cast %11 : vector<100xf32> to vector<1x100xf32>
    %cst_6 = arith.constant 8.000000e+00 : f32
    %13 = vector.broadcast %cst_6 : f32 to vector<1x100xf32>
    %14 = arith.divf %12, %13 : vector<1x100xf32>
    %c0_7 = arith.constant 0 : index
    %c0_8 = arith.constant 0 : index
    %c0_9 = arith.constant 0 : index
    %15 = vector.load %arg2[%c0_7, %c0_8, %c0_9] : memref<3x1x100xf32, #tpu.memory_space<vmem>>, vector<1x1x100xf32>
    %16 = vector.shape_cast %15 : vector<1x1x100xf32> to vector<1x100xf32>
    %cst_10 = arith.constant 9.99999974E-6 : f32
    %17 = vector.broadcast %cst_10 : f32 to vector<1x100xf32>
    %18 = arith.addf %14, %17 : vector<1x100xf32>
    %19 = math.rsqrt %18 : vector<1x100xf32>
    %20 = arith.mulf %16, %19 : vector<1x100xf32>
    %c0_11 = arith.constant 0 : index
    %c0_12 = arith.constant 0 : index
    %c0_13 = arith.constant 0 : index
    %21 = vector.load %arg3[%c0_11, %c0_12, %c0_13] : memref<3x1x100xf32, #tpu.memory_space<vmem>>, vector<1x1x100xf32>
    %22 = vector.shape_cast %21 : vector<1x1x100xf32> to vector<1x100xf32>
    %23 = arith.mulf %7, %20 : vector<1x100xf32>
    %24 = arith.subf %22, %23 : vector<1x100xf32>
    %25 = vector.broadcast %20 : vector<1x100xf32> to vector<8x100xf32>
    %26 = arith.mulf %3, %25 : vector<8x100xf32>
    %27 = vector.broadcast %24 : vector<1x100xf32> to vector<8x100xf32>
    %28 = arith.addf %26, %27 : vector<8x100xf32>
    %c0_14 = arith.constant 0 : index
    %c0_15 = arith.constant 0 : index
    %29 = vector.load %arg4[%c0_14, %c0_15] : memref<8x100xf32, #tpu.memory_space<vmem>>, vector<8x100xf32>
    tpu.vector_store %arg4[%c0_14, %c0_15], %28 {strides = array<i32>} : memref<8x100xf32, #tpu.memory_space<vmem>>, vector<8x100xf32>,
    %30 = vector.extract_strided_slice %2 {offsets = [0, 128], sizes = [8, 100], strides = [1, 1]} : vector<8x384xf32> to vector<8x100xf32>
    %cst_16 = arith.constant dense<0.000000e+00> : vector<100xf32>
    %31 = vector.multi_reduction <add>, %30, %cst_16 [0] : vector<8x100xf32> to vector<100xf32>
    %32 = vector.shape_cast %31 : vector<100xf32> to vector<1x100xf32>
    %cst_17 = arith.constant 8.000000e+00 : f32
    %33 = vector.broadcast %cst_17 : f32 to vector<1x100xf32>
    %34 = arith.divf %32, %33 : vector<1x100xf32>
    %35 = vector.broadcast %34 : vector<1x100xf32> to vector<8x100xf32>
    %36 = arith.subf %30, %35 : vector<8x100xf32>
    %37 = arith.mulf %36, %36 : vector<8x100xf32>
    %cst_18 = arith.constant dense<0.000000e+00> : vector<100xf32>
    %38 = vector.multi_reduction <add>, %37, %cst_18 [0] : vector<8x100xf32> to vector<100xf32>
    %39 = vector.shape_cast %38 : vector<100xf32> to vector<1x100xf32>
    %cst_19 = arith.constant 8.000000e+00 : f32
    %40 = vector.broadcast %cst_19 : f32 to vector<1x100xf32>
    %41 = arith.divf %39, %40 : vector<1x100xf32>
    %c1 = arith.constant 1 : index
    %c0_20 = arith.constant 0 : index
    %c0_21 = arith.constant 0 : index
    %42 = vector.load %arg2[%c1, %c0_20, %c0_21] : memref<3x1x100xf32, #tpu.memory_space<vmem>>, vector<1x1x100xf32>
    %43 = vector.shape_cast %42 : vector<1x1x100xf32> to vector<1x100xf32>
    %cst_22 = arith.constant 9.99999974E-6 : f32
    %44 = vector.broadcast %cst_22 : f32 to vector<1x100xf32>
    %45 = arith.addf %41, %44 : vector<1x100xf32>
    %46 = math.rsqrt %45 : vector<1x100xf32>
    %47 = arith.mulf %43, %46 : vector<1x100xf32>
    %c1_23 = arith.constant 1 : index
    %c0_24 = arith.constant 0 : index
    %c0_25 = arith.constant 0 : index
    %48 = vector.load %arg3[%c1_23, %c0_24, %c0_25] : memref<3x1x100xf32, #tpu.memory_space<vmem>>, vector<1x1x100xf32>
    %49 = vector.shape_cast %48 : vector<1x1x100xf32> to vector<1x100xf32>
    %50 = arith.mulf %34, %47 : vector<1x100xf32>
    %51 = arith.subf %49, %50 : vector<1x100xf32>
    %52 = vector.broadcast %47 : vector<1x100xf32> to vector<8x100xf32>
    %53 = arith.mulf %30, %52 : vector<8x100xf32>
    %54 = vector.broadcast %51 : vector<1x100xf32> to vector<8x100xf32>
    %55 = arith.addf %53, %54 : vector<8x100xf32>
    %c0_26 = arith.constant 0 : index
    %c0_27 = arith.constant 0 : index
    %56 = vector.load %arg5[%c0_26, %c0_27] : memref<8x100xf32, #tpu.memory_space<vmem>>, vector<8x100xf32>
    tpu.vector_store %arg5[%c0_26, %c0_27], %55 {strides = array<i32>} : memref<8x100xf32, #tpu.memory_space<vmem>>, vector<8x100xf32>,
    %57 = vector.extract_strided_slice %2 {offsets = [0, 256], sizes = [8, 100], strides = [1, 1]} : vector<8x384xf32> to vector<8x100xf32>
    %cst_28 = arith.constant dense<0.000000e+00> : vector<100xf32>
    %58 = vector.multi_reduction <add>, %57, %cst_28 [0] : vector<8x100xf32> to vector<100xf32>
    %59 = vector.shape_cast %58 : vector<100xf32> to vector<1x100xf32>
    %cst_29 = arith.constant 8.000000e+00 : f32
    %60 = vector.broadcast %cst_29 : f32 to vector<1x100xf32>
    %61 = arith.divf %59, %60 : vector<1x100xf32>
    %62 = vector.broadcast %61 : vector<1x100xf32> to vector<8x100xf32>
    %63 = arith.subf %57, %62 : vector<8x100xf32>
    %64 = arith.mulf %63, %63 : vector<8x100xf32>
    %cst_30 = arith.constant dense<0.000000e+00> : vector<100xf32>
    %65 = vector.multi_reduction <add>, %64, %cst_30 [0] : vector<8x100xf32> to vector<100xf32>
    %66 = vector.shape_cast %65 : vector<100xf32> to vector<1x100xf32>
    %cst_31 = arith.constant 8.000000e+00 : f32
    %67 = vector.broadcast %cst_31 : f32 to vector<1x100xf32>
    %68 = arith.divf %66, %67 : vector<1x100xf32>
    %c2 = arith.constant 2 : index
    %c0_32 = arith.constant 0 : index
    %c0_33 = arith.constant 0 : index
    %69 = vector.load %arg2[%c2, %c0_32, %c0_33] : memref<3x1x100xf32, #tpu.memory_space<vmem>>, vector<1x1x100xf32>
    %70 = vector.shape_cast %69 : vector<1x1x100xf32> to vector<1x100xf32>
    %cst_34 = arith.constant 9.99999974E-6 : f32
    %71 = vector.broadcast %cst_34 : f32 to vector<1x100xf32>
    %72 = arith.addf %68, %71 : vector<1x100xf32>
    %73 = math.rsqrt %72 : vector<1x100xf32>
    %74 = arith.mulf %70, %73 : vector<1x100xf32>
    %c2_35 = arith.constant 2 : index
    %c0_36 = arith.constant 0 : index
    %c0_37 = arith.constant 0 : index
    %75 = vector.load %arg3[%c2_35, %c0_36, %c0_37] : memref<3x1x100xf32, #tpu.memory_space<vmem>>, vector<1x1x100xf32>
    %76 = vector.shape_cast %75 : vector<1x1x100xf32> to vector<1x100xf32>
    %77 = arith.mulf %61, %74 : vector<1x100xf32>
    %78 = arith.subf %76, %77 : vector<1x100xf32>
    %79 = vector.broadcast %74 : vector<1x100xf32> to vector<8x100xf32>
    %80 = arith.mulf %57, %79 : vector<8x100xf32>
    %81 = vector.broadcast %78 : vector<1x100xf32> to vector<8x100xf32>
    %82 = arith.addf %80, %81 : vector<8x100xf32>
    %c0_38 = arith.constant 0 : index
    %c0_39 = arith.constant 0 : index
    %83 = vector.load %arg6[%c0_38, %c0_39] : memref<8x100xf32, #tpu.memory_space<vmem>>, vector<8x100xf32>
    tpu.vector_store %arg6[%c0_38, %c0_39], %82 {strides = array<i32>} : memref<8x100xf32, #tpu.memory_space<vmem>>, vector<8x100xf32>,
    return
  }
}

</mosaic_0001>

<bundles_post_ra>
// kernel: shared_linear_layers.1
= control target key start
LH: loop header
LB: loop body
LE: loop exit
PB: predicated region body
PF: predicated region fallthrough
CT: control target
= control target key end

     0   :  { %12 = vsyncpa [#allocation3], 0  ;;  %vm143_vm0 = vcmask 1043456   ;;  %vm139_vm1 = vcmask 359424   ;;  %v743_v29 = vmov 0.0   ;;  %s1202_s0 = inlined_call_operand.vmem [shape: f32[8,300], index: 0, kind: input, shape index: {}]   ;;  %s1203_s1 = inlined_call_operand.vmem [shape: f32[300,384], index: 1, kind: input, shape index: {}]   ;;  %s1204_s2 = inlined_call_operand.vmem [shape: f32[3,1,100], index: 2, kind: input, shape index: {}]   ;;  %s1205_s3 = inlined_call_operand.vmem [shape: f32[3,1,100], index: 3, kind: input, shape index: {}]   ;;  %s1206_s4 = inlined_call_operand.hbm [shape: f32[8,100], index: 4, kind: output, shape index: {0}]   ;;  %s1207_s5 = inlined_call_operand.hbm [shape: f32[8,100], index: 5, kind: output, shape index: {1}]   ;;  %s1208_s6 = inlined_call_operand.hbm [shape: f32[8,100], index: 6, kind: output, shape index: {2}]  }
   0x1   :  { %v71_v0 = vld [vmem:[%s1203_s1 + $0x170] sm:$0xff]  ;;  %v137_v1 = vld [vmem:[%s1203_s1 + $0x380] sm:$0xf]  ;;  %v70_v2 = vld [vmem:[%s1203_s1 + $0x168] sm:$0xff]  ;;  %288 = vmatprep.mubr.f32.mxu1 %v743_v29 }
   0x2   :  { %153 = vmatprep.subr.mxu0 %v71_v0  ;;  %602 = vmatprep.subr.msk.mxu1 %vm143_vm0, %v137_v1  ;;  %v136_v3 = vld [vmem:[%s1203_s1 + $0x378] sm:$0xf]  ;;  %v134_v5 = vld [vmem:[%s1203_s1 + $0x368] sm:$0xff]  ;;  %v67_v6 = vld [vmem:[%s1203_s1 + $0x150] sm:$0xff] }
   0x3   :  { %v68_v4 = vld [vmem:[%s1203_s1 + $0x158] sm:$0xff]  ;;  %154 = vmatpush1.msra.mxu0 %v70_v2  ;;  %603 = vmatpush1.msk.msra.mxu1 %vm143_vm0, %v136_v3  ;;  %v133_v7 = vld [vmem:[%s1203_s1 + $0x360] sm:$0xff]  ;;  %v131_v9 = vld [vmem:[%s1203_s1 + $0x350] sm:$0xff] }
   0x4   :  { %v65_v8 = vld [vmem:[%s1203_s1 + $0x140] sm:$0xff]  ;;  %155 = vmatprep.subr.mxu0 %v68_v4  ;;  %246 = vmatprep.subr.mxu1 %v134_v5  ;;  %v64_v10 = vld [vmem:[%s1203_s1 + $0x138] sm:$0xff]  ;;  %v130_v11 = vld [vmem:[%s1203_s1 + $0x348] sm:$0xff] }
   0x5   :  { %156 = vmatpush1.msra.mxu0 %v67_v6  ;;  %247 = vmatpush1.msra.mxu1 %v133_v7  ;;  %v62_v12 = vld [vmem:[%s1203_s1 + $0x128] sm:$0xff]  ;;  %v128_v13 = vld [vmem:[%s1203_s1 + $0x338] sm:$0xff]  ;;  %v61_v14 = vld [vmem:[%s1203_s1 + $0x120] sm:$0xff] }
   0x6   :  { %157 = vmatprep.subr.mxu0 %v65_v8  ;;  %248 = vmatprep.subr.mxu1 %v131_v9  ;;  %v127_v15 = vld [vmem:[%s1203_s1 + $0x330] sm:$0xff]  ;;  %v125_v17 = vld [vmem:[%s1203_s1 + $0x320] sm:$0xff]  ;;  %v58_v18 = vld [vmem:[%s1203_s1 + $0x108] sm:$0xff] }
   0x7   :  { %158 = vmatpush1.msra.mxu0 %v64_v10  ;;  %249 = vmatpush1.msra.mxu1 %v130_v11  ;;  %v59_v16 = vld [vmem:[%s1203_s1 + $0x110] sm:$0xff]  ;;  %v124_v19 = vld [vmem:[%s1203_s1 + $0x318] sm:$0xff]  ;;  %v122_v21 = vld [vmem:[%s1203_s1 + $0x308] sm:$0xff] }
   0x8   :  { %159 = vmatprep.subr.mxu0 %v62_v12  ;;  %250 = vmatprep.subr.mxu1 %v128_v13  ;;  %v56_v20 = vld [vmem:[%s1203_s1 + $0xf8] sm:$0xff]  ;;  %v55_v22 = vld [vmem:[%s1203_s1 + $0xf0] sm:$0xff]  ;;  %v121_v23 = vld [vmem:[%s1203_s1 + $0x300] sm:$0xff] }
   0x9   :  { %160 = vmatpush1.msra.mxu0 %v61_v14  ;;  %251 = vmatpush1.msra.mxu1 %v127_v15  ;;  %v53_v24 = vld [vmem:[%s1203_s1 + $0xe0] sm:$0xff]  ;;  %v120_v25 = vld [vmem:[%s1203_s1 + $0x2f8] sm:$0xff]  ;;  %v869_v27 = vld [vmem:[%s1202_s0 + $0x10] sm:$0xff] }
   0xa   :  { %161 = vmatprep.subr.mxu0 %v59_v16  ;;  %252 = vmatprep.subr.mxu1 %v125_v17  ;;  %v52_v26 = vld [vmem:[%s1203_s1 + $0xd8] sm:$0xff]  ;;  %v50_v28 = vld [vmem:[%s1203_s1 + $0xc8] sm:$0xff]  ;;  %v49_v31 = vld [vmem:[%s1203_s1 + $0xc0] sm:$0xff] }
   0xb   :  { %162 = vmatpush1.msra.mxu0 %v58_v18  ;;  %253 = vmatpush1.msra.mxu1 %v124_v19  ;;  %v72_v30 = vld [vmem:[%s1203_s1 + $0x178] sm:$0xff]  ;;  %v117_v32 = vld [vmem:[%s1203_s1 + $0x2e0] sm:$0xff]  ;;  %v47_v33 = vld [vmem:[%s1203_s1 + $0xb0] sm:$0xff] }
   0xc   :  { %163 = vmatprep.subr.mxu0 %v56_v20  ;;  %254 = vmatprep.subr.mxu1 %v122_v21  ;;  %v69_v34 = vld [vmem:[%s1203_s1 + $0x160] sm:$0xff]  ;;  %v46_v35 = vld [vmem:[%s1203_s1 + $0xa8] sm:$0xff]  ;;  %v44_v37 = vld [vmem:[%s1203_s1 + $0x98] sm:$0xff] }
   0xd   :  { %164 = vmatpush1.msra.mxu0 %v55_v22  ;;  %255 = vmatpush1.msra.mxu1 %v121_v23  ;;  %v114_v36 = vld [vmem:[%s1203_s1 + $0x2c8] sm:$0xff]  ;;  %v43_v39 = vld [vmem:[%s1203_s1 + $0x90] sm:$0xff]  ;;  %v41_v41 = vld [vmem:[%s1203_s1 + $0x80] sm:$0xff] }
   0xe   :  { %165 = vmatprep.subr.mxu0 %v53_v24  ;;  %611 = vmatprep.subr.mxu1 %v120_v25  ;;  %v66_v38 = vld [vmem:[%s1203_s1 + $0x148] sm:$0xff]  ;;  %v111_v40 = vld [vmem:[%s1203_s1 + $0x2b0] sm:$0xff]  ;;  %v40_v43 = vld [vmem:[%s1203_s1 + $0x78] sm:$0xff] }
   0xf   :  { %166 = vmatpush1.msra.mxu0 %v52_v26  ;;  %604 = vmatmul.mubr.msk.f32.vlgmr.msra.gmra.mxu1 %vm139_vm1, %v869_v27  ;;  %v63_v42 = vld [vmem:[%s1203_s1 + $0x130] sm:$0xff]  ;;  %v108_v44 = vld [vmem:[%s1203_s1 + $0x298] sm:$0xff]  ;;  %v38_v45 = vld [vmem:[%s1203_s1 + $0x68] sm:$0xff] }
  0x10   :  { %167 = vmatprep.subr.mxu0 %v50_v28  ;;  %612 = vmatpush3.msra.mxu1 %v72_v30  ;;  %v60_v46 = vld [vmem:[%s1203_s1 + $0x118] sm:$0xff]  ;;  %v37_v47 = vld [vmem:[%s1203_s1 + $0x60] sm:$0xff]  ;;  %v35_v49 = vld [vmem:[%s1203_s1 + $0x50] sm:$0xff] }
  0x11   :  { %168 = vmatpush1.msra.mxu0 %v49_v31  ;;  %613 = vmatprep.subr.mxu1 %v117_v32  ;;  %v105_v48 = vld [vmem:[%s1203_s1 + $0x280] sm:$0xff]  ;;  %v34_v51 = vld [vmem:[%s1203_s1 + $0x48] sm:$0xff]  ;;  %v32_v53 = vld [vmem:[%s1203_s1 + $0x38] sm:$0xff] }
  0x12   :  { %169 = vmatprep.subr.mxu0 %v47_v33  ;;  %614 = vmatpush3.msra.mxu1 %v69_v34  ;;  %v57_v50 = vld [vmem:[%s1203_s1 + $0x100] sm:$0xff]  ;;  %v102_v52 = vld [vmem:[%s1203_s1 + $0x268] sm:$0xff]  ;;  %v31_v55 = vld [vmem:[%s1203_s1 + $0x30] sm:$0xff] }
  0x13   :  { %170 = vmatpush1.msra.mxu0 %v46_v35  ;;  %615 = vmatprep.subr.mxu1 %v114_v36  ;;  %v54_v54 = vld [vmem:[%s1203_s1 + $0xe8] sm:$0xff]  ;;  %v99_v56 = vld [vmem:[%s1203_s1 + $0x250] sm:$0xff]  ;;  %v29_v57 = vld [vmem:[%s1203_s1 + $0x20] sm:$0xff] }
  0x14   :  { %171 = vmatprep.subr.mxu0 %v44_v37  ;;  %616 = vmatpush3.msra.mxu1 %v66_v38  ;;  %v51_v58 = vld [vmem:[%s1203_s1 + $0xd0] sm:$0xff]  ;;  %v28_v59 = vld [vmem:[%s1203_s1 + $0x18] sm:$0xff]  ;;  %v26_v61 = vld [vmem:[%s1203_s1 + $0x8] sm:$0xff] }
  0x15   :  { %172 = vmatpush1.msra.mxu0 %v43_v39  ;;  %617 = vmatprep.subr.mxu1 %v111_v40  ;;  %v96_v60 = vld [vmem:[%s1203_s1 + $0x238] sm:$0xff]  ;;  %v25_v63 = vld [vmem:[%s1203_s1] sm:$0xff]  ;;  %v119_v1 = vld [vmem:[%s1203_s1 + $0x2f0] sm:$0xff] }
  0x16   :  { %173 = vmatprep.subr.mxu0 %v41_v41  ;;  %618 = vmatpush3.msra.mxu1 %v63_v42  ;;  %v48_v62 = vld [vmem:[%s1203_s1 + $0xb8] sm:$0xff]  ;;  %v93_v0 = vld [vmem:[%s1203_s1 + $0x220] sm:$0xff]  ;;  %v118_v3 = vld [vmem:[%s1203_s1 + $0x2e8] sm:$0xff] }
  0x17   :  { %174 = vmatpush1.msra.mxu0 %v40_v43  ;;  %619 = vmatprep.subr.mxu1 %v108_v44  ;;  %v45_v2 = vld [vmem:[%s1203_s1 + $0xa0] sm:$0xff]  ;;  %v90_v4 = vld [vmem:[%s1203_s1 + $0x208] sm:$0xff]  ;;  %v116_v5 = vld [vmem:[%s1203_s1 + $0x2d8] sm:$0xff] }
  0x18   :  { %175 = vmatprep.subr.mxu0 %v38_v45  ;;  %620 = vmatpush3.msra.mxu1 %v60_v46  ;;  %v42_v6 = vld [vmem:[%s1203_s1 + $0x88] sm:$0xff]  ;;  %v115_v7 = vld [vmem:[%s1203_s1 + $0x2d0] sm:$0xff]  ;;  %v113_v9 = vld [vmem:[%s1203_s1 + $0x2c0] sm:$0xff] }
  0x19   :  { %176 = vmatpush1.msra.mxu0 %v37_v47  ;;  %621 = vmatprep.subr.mxu1 %v105_v48  ;;  %v87_v8 = vld [vmem:[%s1203_s1 + $0x1f0] sm:$0xff]  ;;  %v112_v11 = vld [vmem:[%s1203_s1 + $0x2b8] sm:$0xff]  ;;  %v110_v13 = vld [vmem:[%s1203_s1 + $0x2a8] sm:$0xff] }
  0x1a   :  { %177 = vmatprep.subr.mxu0 %v35_v49  ;;  %622 = vmatpush3.msra.mxu1 %v57_v50  ;;  %v39_v10 = vld [vmem:[%s1203_s1 + $0x70] sm:$0xff]  ;;  %v84_v12 = vld [vmem:[%s1203_s1 + $0x1d8] sm:$0xff]  ;;  %v109_v15 = vld [vmem:[%s1203_s1 + $0x2a0] sm:$0xff] }
  0x1b   :  { %178 = vmatpush1.msra.mxu0 %v34_v51  ;;  %623 = vmatprep.subr.mxu1 %v102_v52  ;;  %v36_v14 = vld [vmem:[%s1203_s1 + $0x58] sm:$0xff]  ;;  %v81_v16 = vld [vmem:[%s1203_s1 + $0x1c0] sm:$0xff]  ;;  %v107_v17 = vld [vmem:[%s1203_s1 + $0x290] sm:$0xff] }
  0x1c   :  { %179 = vmatprep.subr.mxu0 %v32_v53  ;;  %624 = vmatpush3.msra.mxu1 %v54_v54  ;;  %v33_v18 = vld [vmem:[%s1203_s1 + $0x40] sm:$0xff]  ;;  %v106_v19 = vld [vmem:[%s1203_s1 + $0x288] sm:$0xff] }
  0x1d   :  { %180 = vmatpush1.msra.mxu0 %v31_v55  ;;  %625 = vmatprep.subr.mxu1 %v99_v56 }
  0x1e   :  { %181 = vmatprep.subr.mxu0 %v29_v57  ;;  %626 = vmatpush3.msra.mxu1 %v51_v58 }
  0x1f   :  { %182 = vmatpush1.msra.mxu0 %v28_v59  ;;  %627 = vmatprep.subr.mxu1 %v96_v60 }
  0x20   :  { %183 = vmatprep.subr.mxu0 %v26_v61  ;;  %628 = vmatpush3.msra.mxu1 %v48_v62 }
  0x21   :  { %184 = vmatpush1.msra.mxu0 %v25_v63  ;;  %629 = vmatprep.subr.mxu1 %v93_v0 }
  0x22   :  { %185 = vmatprep.subr.mxu0 %v119_v1  ;;  %630 = vmatpush3.msra.mxu1 %v45_v2 }
  0x23   :  { %186 = vmatpush2.msra.mxu0 %v118_v3  ;;  %631 = vmatprep.subr.mxu1 %v90_v4 }
  0x24   :  { %187 = vmatprep.subr.mxu0 %v116_v5  ;;  %632 = vmatpush3.msra.mxu1 %v42_v6 }
  0x25   :  { %188 = vmatpush2.msra.mxu0 %v115_v7  ;;  %633 = vmatprep.subr.mxu1 %v87_v8 }
  0x26   :  { %189 = vmatprep.subr.mxu0 %v113_v9  ;;  %634 = vmatpush3.msra.mxu1 %v39_v10 }
  0x27   :  { %190 = vmatpush2.msra.mxu0 %v112_v11  ;;  %635 = vmatprep.subr.mxu1 %v84_v12 }
  0x28   :  { %191 = vmatprep.subr.mxu0 %v110_v13 }
  0x29   :  { %13 = vsyncpa [#allocation5], 0  ;;  %636 = vmatpush3.msra.mxu1 %v36_v14  ;;  %192 = vmatpush2.msra.mxu0 %v109_v15  ;;  %v78_v20 = vld [vmem:[%s1203_s1 + $0x1a8] sm:$0xff]  ;;  %v104_v21 = vld [vmem:[%s1203_s1 + $0x278] sm:$0xff]  ;;  %vm744_vm2 = vmmov 0   ;;  %vm435_vm3 = vcmask 818176  }
  0x2a   :  { %637 = vmatprep.subr.mxu1 %v81_v16  ;;  %193 = vmatprep.subr.mxu0 %v107_v17  ;;  %v30_v22 = vld [vmem:[%s1203_s1 + $0x28] sm:$0xff]  ;;  %v103_v23 = vld [vmem:[%s1203_s1 + $0x270] sm:$0xff]  ;;  %v101_v25 = vld [vmem:[%s1203_s1 + $0x260] sm:$0xff]  ;;  %s746_s24 = smov [#allocation4]   ;;  %s747_s26 = smov [#allocation6]  }
  0x2b   :  { %638 = vmatpush3.msra.mxu1 %v33_v18  ;;  %194 = vmatpush2.msra.mxu0 %v106_v19  ;;  %v75_v24 = vld [vmem:[%s1203_s1 + $0x190] sm:$0xff]  ;;  %v23_v28 = vld [vmem:[%s1202_s0 + $0x8] sm:$0xff]  ;;  %v100_v30 = vld [vmem:[%s1203_s1 + $0x258] sm:$0xff]  ;;  %s577_s25 = sshll.u32 %s746_s24, 4  ;;  %s587_s27 = sshll.u32 %s747_s26, 4  ;;  %s578_s25 = int_to_ptr.vmem [resolvable:$true] %s577_s25  ;;  %s588_s27 = int_to_ptr.vmem [resolvable:$true] %s587_s27 }
  0x2c   :  { %639 = vmatprep.subr.mxu1 %v78_v20  ;;  %195 = vmatprep.subr.mxu0 %v104_v21  ;;  %v27_v26 = vld [vmem:[%s1203_s1 + $0x10] sm:$0xff]  ;;  %v22_v31 = vld [vmem:[%s1202_s0] sm:$0xff]  ;;  %v98_v32 = vld [vmem:[%s1203_s1 + $0x248] sm:$0xff] }
  0x2d   :  { %640 = vmatpush3.msra.mxu1 %v30_v22  ;;  %196 = vmatpush2.msra.mxu0 %v103_v23  ;;  %v138_v33 = vld [vmem:[%s1203_s1 + $0x388] sm:$0xf]  ;;  %v97_v34 = vld [vmem:[%s1203_s1 + $0x240] sm:$0xff]  ;;  %v95_v35 = vld [vmem:[%s1203_s1 + $0x230] sm:$0xff] }
  0x2e   :  { %641 = vmatprep.subr.mxu1 %v75_v24  ;;  %197 = vmatprep.subr.mxu0 %v101_v25  ;;  %v135_v36 = vld [vmem:[%s1203_s1 + $0x370] sm:$0xff]  ;;  %v94_v37 = vld [vmem:[%s1203_s1 + $0x228] sm:$0xff]  ;;  %v92_v38 = vld [vmem:[%s1203_s1 + $0x218] sm:$0xff] }
  0x2f   :  { %642 = vmatpush3.msra.mxu1 %v27_v26  ;;  %359 = vmatprep.mubr.f32.mxu1 %v23_v28  ;;  %v132_v39 = vld [vmem:[%s1203_s1 + $0x358] sm:$0xff]  ;;  %v91_v40 = vld [vmem:[%s1203_s1 + $0x210] sm:$0xff]  ;;  %v89_v41 = vld [vmem:[%s1203_s1 + $0x200] sm:$0xff] }
  0x30   :  { %653 = vmatprep.subr.mxu1 %v743_v29  ;;  %198 = vmatpush2.msra.mxu0 %v100_v30  ;;  %v129_v42 = vld [vmem:[%s1203_s1 + $0x340] sm:$0xff]  ;;  %v88_v43 = vld [vmem:[%s1203_s1 + $0x1f8] sm:$0xff]  ;;  %v86_v44 = vld [vmem:[%s1203_s1 + $0x1e8] sm:$0xff] }
  0x31   :  { %360 = vmatmul.mubr.f32.vlgmr.msra.gmra.mxu1 %v22_v31  ;;  %199 = vmatprep.subr.mxu0 %v98_v32  ;;  %v126_v45 = vld [vmem:[%s1203_s1 + $0x328] sm:$0xff]  ;;  %v85_v46 = vld [vmem:[%s1203_s1 + $0x1e0] sm:$0xff]  ;;  %v123_v47 = vld [vmem:[%s1203_s1 + $0x310] sm:$0xff] }
  0x32   :  { %654 = vmatpush3.msk.msra.mxu1 %vm143_vm0, %v138_v33  ;;  %200 = vmatpush2.msra.mxu0 %v97_v34  ;;  %v83_v48 = vld [vmem:[%s1203_s1 + $0x1d0] sm:$0xff]  ;;  %v82_v49 = vld [vmem:[%s1203_s1 + $0x1c8] sm:$0xff]  ;;  %v80_v50 = vld [vmem:[%s1203_s1 + $0x1b8] sm:$0xff] }
  0x33   :  { %655 = vmatprep.subr.mxu1 %v743_v29  ;;  %201 = vmatprep.subr.mxu0 %v95_v35  ;;  %v79_v51 = vld [vmem:[%s1203_s1 + $0x1b0] sm:$0xff]  ;;  %v77_v52 = vld [vmem:[%s1203_s1 + $0x1a0] sm:$0xff]  ;;  %v74_v53 = vld [vmem:[%s1203_s1 + $0x188] sm:$0xff] }
  0x34   :  { %656 = vmatpush3.msra.mxu1 %v135_v36  ;;  %202 = vmatpush2.msra.mxu0 %v94_v37 }
  0x35   :  { %657 = vmatprep.subr.mxu1 %v743_v29  ;;  %203 = vmatprep.subr.mxu0 %v92_v38 }
  0x36   :  { %658 = vmatpush3.msra.mxu1 %v132_v39  ;;  %204 = vmatpush2.msra.mxu0 %v91_v40 }
  0x37   :  { %659 = vmatprep.subr.mxu1 %v743_v29  ;;  %205 = vmatprep.subr.mxu0 %v89_v41 }
  0x38   :  { %660 = vmatpush3.msra.mxu1 %v129_v42  ;;  %206 = vmatpush2.msra.mxu0 %v88_v43 }
  0x39   :  { %661 = vmatprep.subr.mxu1 %v743_v29  ;;  %207 = vmatprep.subr.mxu0 %v86_v44 }
  0x3a   :  { %662 = vmatpush3.msra.mxu1 %v126_v45  ;;  %208 = vmatpush2.msra.mxu0 %v85_v46 }
  0x3b   :  { %663 = vmatprep.subr.mxu1 %v743_v29  ;;  %665 = vmatprep.mubr.msk.f32.mxu1 %vm744_vm2, %v743_v29  ;;  %v76_v29 = vld [vmem:[%s1203_s1 + $0x198] sm:$0xff] }
  0x3c   :  { %664 = vmatpush3.msra.mxu1 %v123_v47  ;;  %209 = vmatprep.subr.mxu0 %v83_v48 }
  0x3d   :  { %666 = vmatmul.mubr.msk.f32.vlgmr.msra.gmra.mxu1 %vm139_vm1, %v869_v27  ;;  %210 = vmatpush2.msra.mxu0 %v82_v49  ;;  %v73_v27 = vld [vmem:[%s1203_s1 + $0x180] sm:$0xff] }
  0x3e   :  { %211 = vmatprep.subr.mxu0 %v80_v50  ;;  %217 = vmatprep.mubr.f32.mxu0 %v23_v28 }
  0x3f   :  { %212 = vmatpush2.msra.mxu0 %v79_v51 }
  0x40   :  { %213 = vmatprep.subr.mxu0 %v77_v52 }
  0x41   :  { %214 = vmatpush2.msra.mxu0 %v76_v29 }
  0x42   :  { %215 = vmatprep.subr.mxu0 %v74_v53 }
  0x43   :  { %216 = vmatpush2.msra.mxu0 %v73_v27 }
  0x44   :  { %218 = vmatmul.mubr.f32.vlgmr.msra.gmra.mxu0 %v22_v31 }
  0xcf   :  { %v290_v54 = vpop.f32.mrf.mxu1 }
  0xd1   :  { %v292_v55 = vpop.f32.mrf.mxu1 }
  0xf1   :  { %v643_v56 = vpop.f32.mrf.mxu1 }
  0xf3   :  { %v644_v57 = vpop.f32.mrf.mxu1 }
  0xf4   :  { %v645_v58 = vadd.f32 %v644_v57, %v643_v56  ;;  %v463_v56 = vlaneseq }
  0xfd   :  { %v431_v59 = vpop.f32.mrf.mxu1 }
  0xfe   :  { %v1151_v60 = vadd.f32 %v645_v58, %v431_v59 }
  0xff   :  { %v667_v61 = vpop.f32.mrf.mxu1 }
 0x100   :  { %v519_v62 = vsel %vm435_vm3, %v1151_v60, 0.0  ;;  %v464_v61 = vshrl.u32 %v463_v56, 7 }
 0x101   :  { %v520_v63 = vrot.slane %v519_v62, 4 }
 0x103   :  { %v521_v0 = vadd.f32 %v520_v63, %v519_v62  ;;  %v609_v62 = vld [vmem:[%s1204_s2 + $0x2] sm:$0x1]  ;;  %v465_v63 = vsub.s32 0, %v464_v61 }
 0x104   :  { %v219_v1 = vpop.f32.mrf.mxu0 }
 0x105   :  { %v522_v2 = vrot.slane %v521_v0, 2  ;;  %v1155_v3 = vadd.f32 %v290_v54, %v219_v1 }
 0x106   :  { %v221_v4 = vpop.f32.mrf.mxu0 }
 0x107   :  { %v523_v5 = vadd.f32 %v522_v2, %v521_v0  ;;  %v436_v6 = vsel %vm435_vm3, %v1155_v3, 0.0  ;;  %v1159_v7 = vadd.f32 %v292_v55, %v221_v4  ;;  %v610_v2 = vld [vmem:[%s1205_s3 + $0x2] sm:$0x1] }
 0x108   :  { %v437_v8 = vrot.slane %v436_v6, 4 }
 0x109   :  { %v524_v9 = vrot.slane %v523_v5, 1  ;;  %v477_v10 = vsel %vm435_vm3, %v1159_v7, 0.0 }
 0x10a   :  { %v438_v11 = vadd.f32 %v437_v8, %v436_v6  ;;  %v478_v12 = vrot.slane %v477_v10, 4  ;;  %v455_v6 = vld [vmem:[%s1204_s2] sm:$0x1] }
 0x10b   :  { %v525_v13 = vadd.f32 %v524_v9, %v523_v5 }
 0x10c   :  { %v439_v14 = vrot.slane %v438_v11, 2  ;;  %v479_v15 = vadd.f32 %v478_v12, %v477_v10 }
 0x10d   :  { %v526_v16 = vmul.f32 0.125, %v525_v13 }
 0x10e   :  { %v440_v17 = vadd.f32 %v439_v14, %v438_v11  ;;  %v480_v18 = vrot.slane %v479_v15, 2  ;;  %v607_v11 = vld [vmem:[%s1204_s2 + $0x1] sm:$0x1]  ;;  %s745_s2 = smov [#allocation2]  }
 0x10f   :  { %v527_v19 = vsub.f32 %v1151_v60, %v526_v16  ;;  %s567_s23 = sshll.u32 %s745_s2, 4  ;;  %s568_s23 = int_to_ptr.vmem [resolvable:$true] %s567_s23 }
 0x110   :  { %v441_v20 = vrot.slane %v440_v17, 1  ;;  %v481_v21 = vadd.f32 %v480_v18, %v479_v15  ;;  %v459_v15 = vld [vmem:[%s1205_s3] sm:$0x1]  ;;  %p684_p1 = scmp.lt.s32.totalorder %s568_s23, %s568_s23 }
 0x111   :  { %v528_v22 = vmul.f32 %v527_v19, %v527_v19 }
 0x112   :  { %v442_v23 = vadd.f32 %v441_v20, %v440_v17  ;;  %v482_v24 = vrot.slane %v481_v21, 1  ;;  %v608_v20 = vld [vmem:[%s1205_s3 + $0x1] sm:$0x1]  ;;  %s679_s3 = scalar_lea.vmem %s568_s23, 128 }
 0x113   :  { %v529_v25 = vsel %vm435_vm3, %v528_v22, 0.0  ;;  %p680_p0 = scmp.ne.s32.totalorder %s568_s23, %s679_s3  ;;  %p685_p2 = scmp.lt.s32.totalorder %s679_s3, %s679_s3 }
 0x114   :  { %v530_v26 = vrot.slane %v529_v25, 4  ;;  %v444_v28 = vmul.f32 0.125, %v442_v23  ;;  %v483_v30 = vadd.f32 %v482_v24, %v481_v21 }
 0x115   :  { %p686_p3 = por %p685_p2, %p684_p1 }
 0x116   :  { %v531_v31 = vadd.f32 %v530_v26, %v529_v25  ;;  %v445_v32 = vsub.f32 %v1155_v3, %v444_v28  ;;  %v484_v33 = vmul.f32 0.125, %v483_v30 }
 0x117   :  { %p687_p4 = pnand %p686_p3, %p680_p0 }
 0x118   :  { %v532_v34 = vrot.slane %v531_v31, 2  ;;  %v446_v35 = vmul.f32 %v445_v32, %v445_v32  ;;  %v485_v36 = vsub.f32 %v1159_v7, %v484_v33 }
 0x11a   :  { %v533_v37 = vadd.f32 %v532_v34, %v531_v31  ;;  %v447_v38 = vsel %vm435_vm3, %v446_v35, 0.0  ;;  %v486_v39 = vmul.f32 %v485_v36, %v485_v36 }
 0x11b   :  { %v448_v40 = vrot.slane %v447_v38, 4 }
 0x11c   :  { %v534_v41 = vrot.slane %v533_v37, 1  ;;  %v487_v42 = vsel %vm435_vm3, %v486_v39, 0.0 }
 0x11d   :  { %v449_v43 = vadd.f32 %v448_v40, %v447_v38  ;;  %v488_v44 = vrot.slane %v487_v42, 4 }
 0x11e   :  { %v535_v45 = vadd.f32 %v534_v41, %v533_v37 }
 0x11f   :  { %v450_v46 = vrot.slane %v449_v43, 2  ;;  %v489_v47 = vadd.f32 %v488_v44, %v487_v42 }
 0x120   :  { %v536_v48 = vmul.f32 0.125, %v535_v45 }
 0x121   :  { %v451_v49 = vadd.f32 %v450_v46, %v449_v43  ;;  %v490_v50 = vrot.slane %v489_v47, 2 }
 0x122   :  { %v539_v51 = vadd.f32 1e-05, %v536_v48 }
 0x123   :  { %v452_v52 = vrot.slane %v451_v49, 1  ;;  %v491_v29 = vadd.f32 %v490_v50, %v489_v47 }
 0x124   :  { %673 = vrsqrt.f32 %v539_v51 }
 0x125   :  { %v453_v53 = vadd.f32 %v452_v52, %v451_v49  ;;  %v492_v27 = vrot.slane %v491_v29, 1 }
 0x127   :  { %v454_v54 = vmul.f32 0.125, %v453_v53  ;;  %v493_v55 = vadd.f32 %v492_v27, %v491_v29 }
 0x129   :  { %v456_v57 = vadd.f32 1e-05, %v454_v54  ;;  %v494_v58 = vmul.f32 0.125, %v493_v55 }
 0x12b   :  { %675 = vrsqrt.f32 %v456_v57  ;;  %v497_v59 = vadd.f32 1e-05, %v494_v58 }
 0x12d   :  { %677 = vrsqrt.f32 %v497_v59 }
 0x131   :  { %v674_v0 = vpop.eup %673 }
 0x132   :  { %v541_v1 = vmul.f32 %v674_v0, %v609_v62 }
 0x134   :  { %v544_v4 = vmul.f32 %v541_v1, %v526_v16  ;;  %v550_v5 = vrot.slane %v541_v1, %v465_v63 }
 0x136   :  { %v545_v8 = vsub.f32 %v610_v2, %v544_v4  ;;  %v552_v10 = vmul.f32 %v550_v5, %v1151_v60 }
 0x138   :  { %v676_v9 = vpop.eup %675  ;;  %v557_v12 = vrot.slane %v545_v8, %v465_v63 }
 0x139   :  { %v458_v13 = vmul.f32 %v676_v9, %v455_v6 }
 0x13a   :  { %v678_v14 = vpop.eup %677  ;;  %v559_v16 = vadd.f32 %v557_v12, %v552_v10 }
 0x13b   :  { %v499_v17 = vmul.f32 %v678_v14, %v607_v11  ;;  %v460_v18 = vmul.f32 %v458_v13, %v444_v28  ;;  %v466_v19 = vrot.slane %v458_v13, %v465_v63 }
 0x13c   :  { %560 = vst.msk [vmem:[#allocation6] sm:$0xff] %vm435_vm3, %v559_v16 }
 0x13d   :  { %v502_v60 = vmul.f32 %v499_v17, %v484_v33  ;;  %v508_v21 = vrot.slane %v499_v17, %v465_v63  ;;  %v461_v22 = vsub.f32 %v459_v15, %v460_v18  ;;  %v468_v24 = vmul.f32 %v466_v19, %v1155_v3 }
 0x13f   :  { %v503_v23 = vsub.f32 %v608_v20, %v502_v60  ;;  %v473_v25 = vrot.slane %v461_v22, %v465_v63  ;;  %v510_v26 = vmul.f32 %v508_v21, %v1159_v7 }
 0x141   :  { %v515_v28 = vrot.slane %v503_v23, %v465_v63  ;;  %v475_v30 = vadd.f32 %v473_v25, %v468_v24 }
 0x143   :  { %v517_v31 = vadd.f32 %v515_v28, %v510_v26  ;;  %476 = vst.msk [vmem:[#allocation2] sm:$0xff] %vm435_vm3, %v475_v30 }
 0x144   :  { %690 = shalt.err (!%p687_p4)
}
 0x145   :  { %570 = dma.vmem_to_hbm [thread:$0]  %s568_s23, 128, %s1206_s4, [#allocation3]   ;;  %518 = vst.msk [vmem:[#allocation4] sm:$0xff] %vm435_vm3, %v517_v31 }
 0x146   :  { %s699_s30 = scalar_lea.vmem %s578_s25, 128  ;;  %p704_p6 = scmp.lt.s32.totalorder %s578_s25, %s578_s25 }
 0x147   :  { %p700_p5 = scmp.ne.s32.totalorder %s578_s25, %s699_s30  ;;  %p705_p7 = scmp.lt.s32.totalorder %s699_s30, %s699_s30 }
 0x149   :  { %p706_p8 = por %p705_p7, %p704_p6 }
 0x14b   :  { %p707_p9 = pnand %p706_p8, %p700_p5 }
 0x14d   :  { %710 = shalt.err (!%p707_p9)
}
 0x14e   :  { %580 = dma.vmem_to_hbm [thread:$0]  %s578_s25, 128, %s1207_s5, [#allocation5]  }
 0x14f   :  { %s719_s9 = scalar_lea.vmem %s588_s27, 128  ;;  %p724_p11 = scmp.lt.s32.totalorder %s588_s27, %s588_s27 }
 0x150   :  { %p720_p10 = scmp.ne.s32.totalorder %s588_s27, %s719_s9  ;;  %p725_p12 = scmp.lt.s32.totalorder %s719_s9, %s719_s9 }
 0x152   :  { %p726_p13 = por %p725_p12, %p724_p11 }
 0x154   :  { %p727_p0 = pnand %p726_p13, %p720_p10 }
 0x156   :  { %730 = shalt.err (!%p727_p0)
}
 0x157   :  { %590 = dma.vmem_to_hbm [thread:$0]  %s588_s27, 128, %s1208_s6, [#allocation5]  }
 0x158   :  { %739 = dma.done.wait [#allocation3], 128  }
 0x159   :  { %740 = vsyncadd [#allocation3], 4294967168 }
 0x15a   :  { %741 = dma.done.wait [#allocation5], 256  }
 0x15b   :  { %742 = vsyncadd [#allocation5], 4294967040 }
 0x15c   :  { %600 = vsyncpa [#allocation3], 1 }
 0x15d   :  { %601 = vsyncpa [#allocation5], 1 }

</bundles_post_ra>
